<compile_context>
chip_gen: v7x
topology: tpu7x:2x2x1
jax: 0.10.0
libtpu: 0.0.40
codegen_flags: <defaults>
</compile_context>

<pallas_src>
import math
import numpy as np
import jax
import jax.numpy as jnp
from jax.experimental import pallas as pl
from jax.experimental.pallas import tpu as pltpu

SOFTMAX_SCALE = 10.0   # module default softmax_scale=10
RES_SCALE = 1.0        # module default res_scale=1
KSIZE = 3
LEVEL = 5
ESCAPE_NAN = 1e-4      # registered buffer escape_NaN
NEG_INF = -1e30


def _round_up(x, m):
    return ((x + m - 1) // m) * m


def _cdiv(a, b):
    return (a + b - 1) // b


# ----------------------------- Pallas kernel ---------------------------------

def _attn_kernel(bias_ref, xp_ref, wkT_ref, wv_ref, o_ref, m_sc, acc_sc):
    """Flash-style attention step for one (batch, query-tile, key-tile) cell.

    Refs:
      bias_ref : (1, tq)    f32   additive score bias (0 valid / -1e30 pad key)
      xp_ref   : (tp, Kq)   bf16  query patch features (softmax_scale folded in)
      wkT_ref  : (Kq, tq)   bf16  L2-normalised key patches, pre-transposed
      wv_ref   : (tq, VC)   bf16  packed value patches; last column is 1.0 for
                                  valid keys -> softmax denominator via the MXU
      o_ref    : (tp, VC)   bf16  softmax-weighted value patches
      m_sc/acc_sc : VMEM scratch (running max / running numerator+denominator)
    """
    qi = pl.program_id(2)

    @pl.when(qi == 0)
    def _init():
        m_sc[...] = jnp.full_like(m_sc, NEG_INF)
        acc_sc[...] = jnp.zeros_like(acc_sc)

    # scores (tp, tq): bf16 operands on the MXU, f32 accumulation.
    s = jnp.dot(xp_ref[...], wkT_ref[...], preferred_element_type=jnp.float32)
    s = s + bias_ref[...]                      # single pass: pad-key masking

    # online softmax update (f32 elementwise math)
    m_prev = m_sc[...]
    m_new = jnp.maximum(m_prev, jnp.max(s, axis=1, keepdims=True))
    alpha = jnp.exp(m_prev - m_new)
    p = jnp.exp(s - m_new)
    # packed value matmul: 9 taps + the ones-column (denominator) in one dot.
    acc_sc[...] = alpha * acc_sc[...] + jnp.dot(
        p.astype(jnp.bfloat16), wv_ref[...],
        preferred_element_type=jnp.float32)
    m_sc[...] = m_new

    @pl.when(qi == pl.num_programs(2) - 1)
    def _finalize():
        acc = acc_sc[...]
        denom = acc[:, -1:]                    # ones-column == sum_j p_j >= 1
        o_ref[...] = (acc * pl.reciprocal(denom, approx=False)
                      ).astype(o_ref.dtype)


def _derived_vmem_limit(tp, tq, kq, vc):
    """Explicit VMEM budget from buffer math: double-buffered I/O + scratch
    + headroom for the compiler's f32 (tp,tq) score/exp temporaries."""
    in_b = 2 * (tq * 4 + tp * kq * 2 + kq * tq * 2 + tq * vc * 2)
    out_b = 2 * (tp * vc * 2)
    scratch = tp * 128 * 4 + tp * vc * 4
    temps = 4 * tp * tq * 4
    total = in_b + out_b + scratch + temps
    # 2x headroom, floor 16 MiB, cap 48 MiB (v7x has only 64 MiB physical).
    return int(min(48 * 1024 * 1024, max(16 * 1024 * 1024, 2 * total)))


def pyramid_attention_call(xp, wkn, wv, *, tp=None, tq=None,
                           softmax_scale=SOFTMAX_SCALE):
    """Attention hot path.

    xp  : (N, P, Kq)   f32   query 3x3 patch features
    wkn : (N, Q, Kq)   f32   L2-normalised key patch features (all levels)
    wv  : (N, Q, 9*C)  f32   raw value 3x3 patches, tap-major packing
    returns (N, P, 9*C) bfloat16 softmax-weighted value patches.
    """
    n, p_len, kq = xp.shape
    q_len = wkn.shape[1]
    vc_in = wv.shape[2]

    # tile sizes: tq lane-dense (multiple of 128), tp sublane-aligned.
    tp = 512 if tp is None else tp
    tq = 1024 if tq is None else tq
    tp = _round_up(min(tp, p_len), 8)
    tq = _round_up(min(tq, q_len), 128)
    # v7x has two TensorCores; keep >= 2 'parallel' grid cells when possible.
    if n * _cdiv(p_len, tp) < 2 and p_len > 8:
        tp = _round_up(_cdiv(p_len, 2), 8)
    pp = _round_up(p_len, tp)
    qp = _round_up(q_len, tq)
    kqp = _round_up(kq, 16)            # bf16 sublane-pair aligned contraction
    vc = _round_up(vc_in + 1, 128)     # lane-dense + >=1 spare ones-column

    # queries: fold softmax_scale in f32, then cast to bf16 and pad.
    xp = (xp * softmax_scale).astype(jnp.bfloat16)
    xp = jnp.pad(xp, ((0, 0), (0, pp - p_len), (0, kqp - kq)))

    # keys: pre-transpose to (N, Kq, Q) so the score dot is (M,K)@(K,N).
    wkT = jnp.transpose(wkn, (0, 2, 1)).astype(jnp.bfloat16)
    wkT = jnp.pad(wkT, ((0, 0), (0, kqp - kq), (0, qp - q_len)))

    # values + ones-column (1.0 for valid keys) -> softmax denominator.
    wv = jnp.pad(wv.astype(jnp.bfloat16),
                 ((0, 0), (0, qp - q_len), (0, vc - 1 - vc_in)))
    ones_col = jnp.concatenate(
        [jnp.ones((n, q_len, 1), jnp.bfloat16),
         jnp.zeros((n, qp - q_len, 1), jnp.bfloat16)], axis=1)
    wv = jnp.concatenate([wv, ones_col], axis=2)

    # additive score bias: 0 for valid key columns, -1e30 for padded ones.
    bias = jnp.zeros((1, qp), jnp.float32).at[:, q_len:].set(NEG_INF)

    grid = (n, pp // tp, qp // tq)

    out = pl.pallas_call(
        _attn_kernel,
        out_shape=jax.ShapeDtypeStruct((n, pp, vc), jnp.bfloat16),
        grid=grid,
        in_specs=[
            pl.BlockSpec((1, tq), lambda b, pi, qi: (0, qi)),
            pl.BlockSpec((None, tp, kqp), lambda b, pi, qi: (b, pi, 0)),
            pl.BlockSpec((None, kqp, tq), lambda b, pi, qi: (b, 0, qi)),
            pl.BlockSpec((None, tq, vc), lambda b, pi, qi: (b, qi, 0)),
        ],
        out_specs=pl.BlockSpec((None, tp, vc), lambda b, pi, qi: (b, pi, 0)),
        scratch_shapes=[
            pltpu.VMEM((tp, 1), jnp.float32),    # running max m
            pltpu.VMEM((tp, vc), jnp.float32),   # running numerator (+denom)
        ],
        compiler_params=pltpu.CompilerParams(
            dimension_semantics=("parallel", "parallel", "arbitrary"),
            vmem_limit_bytes=_derived_vmem_limit(tp, tq, kqp, vc)),
    )(bias, xp, wkT, wv)

    return out[:, :p_len, :vc_in]


# ----------------------------- XLA glue (non-hot-path) -----------------------

def conv1x1_prelu(x_nhwc, w, b, a):
    # BasicBlock(conv 1x1, bias=True, bn=False, act=PReLU()); left to XLA.
    y = jnp.einsum('nhwc,cd->nhwd', x_nhwc, w) + b
    return jnp.where(y >= 0.0, y, a * y)


def _cubic_weights(t, a=-0.75):
    # PyTorch bicubic convolution kernel (A = -0.75).
    w0 = ((a * (t + 1) - 5 * a) * (t + 1) + 8 * a) * (t + 1) - 4 * a
    w1 = ((a + 2) * t - (a + 3)) * t * t + 1
    w2 = ((a + 2) * (1 - t) - (a + 3)) * (1 - t) * (1 - t) + 1
    w3 = ((a * (2 - t) - 5 * a) * (2 - t) + 8 * a) * (2 - t) - 4 * a
    return (w0, w1, w2, w3)


def _bicubic_matrix(in_size, scale):
    # F.interpolate(mode='bicubic', align_corners=False, scale_factor=s):
    #   out = floor(in * s), src = (dst + 0.5) / s - 0.5, indices clamped.
    out_size = int(math.floor(in_size * scale))
    m = np.zeros((out_size, in_size), dtype=np.float64)
    for o in range(out_size):
        src = (o + 0.5) / scale - 0.5
        f = int(math.floor(src))
        t = src - f
        ws = _cubic_weights(t)
        for k in range(4):
            idx = min(max(f - 1 + k, 0), in_size - 1)
            m[o, idx] += ws[k]
    return jnp.asarray(m, jnp.float32)


def bicubic_resize(x_nhwc, scale):
    # separable bicubic downscale (glue; not the attention hot path)
    _, h, w, _ = x_nhwc.shape
    mh = _bicubic_matrix(h, scale)
    mw = _bicubic_matrix(w, scale)
    return jnp.einsum('oh,pw,nhwc->nopc', mh, mw, x_nhwc)


def _extract_patches_nhwc(x):
    """extract_image_patches(ksize=3, stride=1, rate=1, padding='same').
    Returns (N, H*W, 9*C), tap index k = 3*dy + dx packed tap-major."""
    n, h, w, c = x.shape
    xp = jnp.pad(x, ((0, 0), (1, 1), (1, 1), (0, 0)))
    parts = [xp[:, dy:dy + h, dx:dx + w, :] for dy in range(3) for dx in range(3)]
    pt = jnp.stack(parts, axis=3)                      # (N, H, W, 9, C)
    return pt.reshape(n, h * w, 9 * c)


def init_params(key, channel=8, reduction=2):
    # deterministic synthetic params (Conv2d 1x1 weights/bias + PReLU slope 0.25)
    cr = channel // reduction
    ks = jax.random.split(key, 6)
    return dict(
        w_match_base=0.1 * jax.random.normal(ks[0], (channel, cr), jnp.float32),
        b_match_base=0.01 * jax.random.normal(ks[1], (cr,), jnp.float32),
        a_match_base=0.25,
        w_match=0.1 * jax.random.normal(ks[2], (channel, cr), jnp.float32),
        b_match=0.01 * jax.random.normal(ks[3], (cr,), jnp.float32),
        a_match=0.25,
        w_assembly=0.1 * jax.random.normal(ks[4], (channel, channel), jnp.float32),
        b_assembly=0.01 * jax.random.normal(ks[5], (channel,), jnp.float32),
        a_assembly=0.25,
    )


def pyramid_attention_forward(x, params, *, tp=None, tq=None):
    """x: (N, C, H, W) float32 (NCHW, as in PyTorch). Returns (N, C, H, W)."""
    n, c, h, w = x.shape
    scales = [1.0 - i / 10 for i in range(LEVEL)]        # [1.0,0.9,0.8,0.7,0.6]

    x_nhwc = jnp.transpose(x, (0, 2, 3, 1))              # channel-last

    # queries: conv_match_L_base -> per-pixel 3x3 patch features
    match_base = conv1x1_prelu(x_nhwc, params['w_match_base'],
                               params['b_match_base'], params['a_match_base'])
    xp = _extract_patches_nhwc(match_base)               # (N, P, Kq) f32

    # keys / values from every pyramid level
    wk_list, wv_list = [], []
    for s in scales:
        ref = x_nhwc if s == 1 else bicubic_resize(x_nhwc, s)
        base = conv1x1_prelu(ref, params['w_assembly'], params['b_assembly'],
                             params['a_assembly'])       # (N, hs, ws, C)
        refm = conv1x1_prelu(ref, params['w_match'], params['b_match'],
                             params['a_match'])          # (N, hs, ws, C/r)
        wv_list.append(_extract_patches_nhwc(base))      # (N, Ls, 9*C)
        wk_list.append(_extract_patches_nhwc(refm))      # (N, Ls, Kq)

    wk = jnp.concatenate(wk_list, axis=1)                # (N, Q, Kq)  f32
    wv = jnp.concatenate(wv_list, axis=1)                # (N, Q, 9*C) f32

    # key L2 normalisation hoisted out of the kernel (f32):
    #   wi / max(sqrt(sum(wi^2)), escape_NaN)
    norm = jnp.sqrt(jnp.sum(wk * wk, axis=2, keepdims=True))
    wkn = wk / jnp.maximum(norm, ESCAPE_NAN)

    # attention hot path: bf16 MXU operands, f32 accumulation, bf16 output
    y = pyramid_attention_call(xp, wkn, wv, tp=tp, tq=tq)  # (N, P, 9*C) bf16

    # conv_transpose2d(stride=1, padding=1) fold == 9 static shift-and-adds
    yr = y.reshape(n, h, w, KSIZE, KSIZE, c)
    acc = jnp.zeros((n, h, w, c), jnp.float32)
    for ky in range(KSIZE):
        for kx in range(KSIZE):
            dy, dx = ky - 1, kx - 1
            tap = yr[:, :, :, ky, kx, :].astype(jnp.float32)
            ypad = jnp.pad(tap, ((0, 0), (1, 1), (1, 1), (0, 0)))
            acc = acc + ypad[:, 1 - dy:1 - dy + h, 1 - dx:1 - dx + w, :]

    out = acc * 0.25 + x_nhwc * RES_SCALE                # yi/4 + res*res_scale
    return jnp.transpose(out, (0, 3, 1, 2))


if __name__ == "__main__":
    key = jax.random.PRNGKey(0)
    k_x, k_p = jax.random.split(key)
    N, C, H, W = 2, 8, 12, 12
    x = jax.random.normal(k_x, (N, C, H, W), jnp.float32)
    params = init_params(k_p, channel=C, reduction=2)

    # small tiles so the test exercises multi-tile P (2 query tiles) and the
    # online-softmax accumulation across several key tiles (Q=438 -> 4 tiles).
    fwd = jax.jit(lambda xx, pp: pyramid_attention_forward(xx, pp, tp=128, tq=128))
    y = jax.block_until_ready(fwd(x, params))

    assert y.shape == (N, C, H, W)
    assert bool(jnp.all(jnp.isfinite(y)))
    print("KERNEL_OK")
</pallas_src>

<mosaic_0001>
module attributes {stable_mosaic.version = 11 : i64} {
  func.func @_attn_kernel(%arg0: i32, %arg1: i32, %arg2: i32, %arg3: memref<1x128xf32, #tpu.memory_space<vmem>>, %arg4: memref<1x128x48xbf16, #tpu.memory_space<vmem>>, %arg5: memref<1x48x128xbf16, #tpu.memory_space<vmem>>, %arg6: memref<1x128x128xbf16, #tpu.memory_space<vmem>>, %arg7: memref<1x128x128xbf16, #tpu.memory_space<vmem>>, %arg8: memref<128x1xf32, #tpu.memory_space<vmem>>, %arg9: memref<128x128xf32, #tpu.memory_space<vmem>>) attributes {dimension_semantics = [#tpu.dimension_semantics<parallel>, #tpu.dimension_semantics<parallel>, #tpu.dimension_semantics<arbitrary>], iteration_bounds = array<i64: 2, 2, 4>, scalar_prefetch = 0 : i64, scratch_operands = 2 : i64, tpu.core_type = #tpu.core_type<tc>, window_params = [{transform_indices = @transform_0, window_bounds = array<i64: 1, 128>}, {transform_indices = @transform_1, window_bounds = array<i64: 1, 128, 48>}, {transform_indices = @transform_2, window_bounds = array<i64: 1, 48, 128>}, {transform_indices = @transform_3, window_bounds = array<i64: 1, 128, 128>}, {transform_indices = @transform_4, window_bounds = array<i64: 1, 128, 128>}]} {
    %c0_i32 = arith.constant 0 : i32
    %0 = arith.cmpi eq, %arg2, %c0_i32 : i32
    %1 = arith.extui %0 : i1 to i32
    %c0_i32_0 = arith.constant 0 : i32
    %2 = arith.cmpi ne, %1, %c0_i32_0 : i32
    scf.if %2 {
      %cst_22 = arith.constant -1.000000e+30 : f32
      %33 = vector.broadcast %cst_22 : f32 to vector<128x1xf32>
      %c0_23 = arith.constant 0 : index
      %c0_24 = arith.constant 0 : index
      %34 = vector.load %arg8[%c0_23, %c0_24] : memref<128x1xf32, #tpu.memory_space<vmem>>, vector<128x1xf32>
      tpu.vector_store %arg8[%c0_23, %c0_24], %33 {strides = array<i32>} : memref<128x1xf32, #tpu.memory_space<vmem>>, vector<128x1xf32>,
      %cst_25 = arith.constant 0.000000e+00 : f32
      %35 = vector.broadcast %cst_25 : f32 to vector<128x128xf32>
      %c0_26 = arith.constant 0 : index
      %c0_27 = arith.constant 0 : index
      %36 = vector.load %arg9[%c0_26, %c0_27] : memref<128x128xf32, #tpu.memory_space<vmem>>, vector<128x128xf32>
      tpu.vector_store %arg9[%c0_26, %c0_27], %35 {strides = array<i32>} : memref<128x128xf32, #tpu.memory_space<vmem>>, vector<128x128xf32>,
    } else {
    }
    %c0 = arith.constant 0 : index
    %c0_1 = arith.constant 0 : index
    %c0_2 = arith.constant 0 : index
    %3 = vector.load %arg4[%c0, %c0_1, %c0_2] : memref<1x128x48xbf16, #tpu.memory_space<vmem>>, vector<1x128x48xbf16>
    %4 = vector.shape_cast %3 : vector<1x128x48xbf16> to vector<128x48xbf16>
    %c0_3 = arith.constant 0 : index
    %c0_4 = arith.constant 0 : index
    %c0_5 = arith.constant 0 : index
    %5 = vector.load %arg5[%c0_3, %c0_4, %c0_5] : memref<1x48x128xbf16, #tpu.memory_space<vmem>>, vector<1x48x128xbf16>
    %6 = vector.shape_cast %5 : vector<1x48x128xbf16> to vector<48x128xbf16>
    %cst = arith.constant dense<0.000000e+00> : vector<128x128xf32>
    %7 = tpu.matmul %4, %6, %cst {dimension_numbers = #tpu.dot_dimension_numbers<[1], [0], [0], [1], [0, 0, 1, 1], [], []>} : vector<128x48xbf16>, vector<48x128xbf16>, vector<128x128xf32> -> vector<128x128xf32>
    %c0_6 = arith.constant 0 : index
    %c0_7 = arith.constant 0 : index
    %8 = vector.load %arg3[%c0_6, %c0_7] : memref<1x128xf32, #tpu.memory_space<vmem>>, vector<1x128xf32>
    %9 = vector.broadcast %8 : vector<1x128xf32> to vector<128x128xf32>
    %10 = arith.addf %7, %9 : vector<128x128xf32>
    %c0_8 = arith.constant 0 : index
    %c0_9 = arith.constant 0 : index
    %11 = vector.load %arg8[%c0_8, %c0_9] : memref<128x1xf32, #tpu.memory_space<vmem>>, vector<128x1xf32>
    %cst_10 = arith.constant dense<0xFF800000> : vector<128xf32>
    %12 = vector.multi_reduction <maximumf>, %10, %cst_10 [1] : vector<128x128xf32> to vector<128xf32>
    %13 = vector.shape_cast %12 : vector<128xf32> to vector<128x1xf32>
    %14 = arith.maximumf %11, %13 : vector<128x1xf32>
    %15 = arith.subf %11, %14 : vector<128x1xf32>
    %16 = math.exp %15 : vector<128x1xf32>
    %17 = vector.broadcast %14 : vector<128x1xf32> to vector<128x128xf32>
    %18 = arith.subf %10, %17 : vector<128x128xf32>
    %19 = math.exp %18 : vector<128x128xf32>
    %c0_11 = arith.constant 0 : index
    %c0_12 = arith.constant 0 : index
    %20 = vector.load %arg9[%c0_11, %c0_12] : memref<128x128xf32, #tpu.memory_space<vmem>>, vector<128x128xf32>
    %21 = vector.broadcast %16 : vector<128x1xf32> to vector<128x128xf32>
    %22 = arith.mulf %21, %20 : vector<128x128xf32>
    %23 = arith.truncf %19 : vector<128x128xf32> to vector<128x128xbf16>
    %c0_13 = arith.constant 0 : index
    %c0_14 = arith.constant 0 : index
    %c0_15 = arith.constant 0 : index
    %24 = vector.load %arg6[%c0_13, %c0_14, %c0_15] : memref<1x128x128xbf16, #tpu.memory_space<vmem>>, vector<1x128x128xbf16>
    %25 = vector.shape_cast %24 : vector<1x128x128xbf16> to vector<128x128xbf16>
    %cst_16 = arith.constant dense<0.000000e+00> : vector<128x128xf32>
    %26 = tpu.matmul %23, %25, %cst_16 {dimension_numbers = #tpu.dot_dimension_numbers<[1], [0], [0], [1], [0, 0, 1, 1], [], []>} : vector<128x128xbf16>, vector<128x128xbf16>, vector<128x128xf32> -> vector<128x128xf32>
    %27 = arith.addf %22, %26 : vector<128x128xf32>
    %c0_17 = arith.constant 0 : index
    %c0_18 = arith.constant 0 : index
    %28 = vector.load %arg9[%c0_17, %c0_18] : memref<128x128xf32, #tpu.memory_space<vmem>>, vector<128x128xf32>
    tpu.vector_store %arg9[%c0_17, %c0_18], %27 {strides = array<i32>} : memref<128x128xf32, #tpu.memory_space<vmem>>, vector<128x128xf32>,
    %c0_19 = arith.constant 0 : index
    %c0_20 = arith.constant 0 : index
    %29 = vector.load %arg8[%c0_19, %c0_20] : memref<128x1xf32, #tpu.memory_space<vmem>>, vector<128x1xf32>
    tpu.vector_store %arg8[%c0_19, %c0_20], %14 {strides = array<i32>} : memref<128x1xf32, #tpu.memory_space<vmem>>, vector<128x1xf32>,
    %c3_i32 = arith.constant 3 : i32
    %30 = arith.cmpi eq, %arg2, %c3_i32 : i32
    %31 = arith.extui %30 : i1 to i32
    %c0_i32_21 = arith.constant 0 : i32
    %32 = arith.cmpi ne, %31, %c0_i32_21 : i32
    scf.if %32 {
      %c0_22 = arith.constant 0 : index
      %c0_23 = arith.constant 0 : index
      %33 = vector.load %arg9[%c0_22, %c0_23] : memref<128x128xf32, #tpu.memory_space<vmem>>, vector<128x128xf32>
      %34 = vector.extract_strided_slice %33 {offsets = [0, 127], sizes = [128, 1], strides = [1, 1]} : vector<128x128xf32> to vector<128x1xf32>
      %35 = tpu.reciprocal %34 : vector<128x1xf32> -> vector<128x1xf32>
      %36 = vector.broadcast %35 : vector<128x1xf32> to vector<128x128xf32>
      %37 = arith.mulf %33, %36 : vector<128x128xf32>
      %38 = arith.truncf %37 : vector<128x128xf32> to vector<128x128xbf16>
      %c0_24 = arith.constant 0 : index
      %c0_25 = arith.constant 0 : index
      %c0_26 = arith.constant 0 : index
      %39 = vector.load %arg7[%c0_24, %c0_25, %c0_26] : memref<1x128x128xbf16, #tpu.memory_space<vmem>>, vector<1x128x128xbf16>
      %40 = vector.shape_cast %39 : vector<1x128x128xbf16> to vector<128x128xbf16>
      %41 = vector.shape_cast %38 : vector<128x128xbf16> to vector<1x128x128xbf16>
      tpu.vector_store %arg7[%c0_24, %c0_25, %c0_26], %41 {strides = array<i32>} : memref<1x128x128xbf16, #tpu.memory_space<vmem>>, vector<1x128x128xbf16>,
    } else {
    }
    return
  }
  func.func @transform_0(%arg0: i32, %arg1: i32, %arg2: i32) -> (i32, i32) {
    %c0_i32 = arith.constant 0 : i32
    %c0_i32_0 = arith.constant 0 : i32
    return %c0_i32, %arg2 : i32, i32
  }
  func.func @transform_1(%arg0: i32, %arg1: i32, %arg2: i32) -> (i32, i32, i32) {
    %c0_i32 = arith.constant 0 : i32
    %c0_i32_0 = arith.constant 0 : i32
    return %arg0, %arg1, %c0_i32 : i32, i32, i32
  }
  func.func @transform_2(%arg0: i32, %arg1: i32, %arg2: i32) -> (i32, i32, i32) {
    %c0_i32 = arith.constant 0 : i32
    %c0_i32_0 = arith.constant 0 : i32
    return %arg0, %c0_i32, %arg2 : i32, i32, i32
  }
  func.func @transform_3(%arg0: i32, %arg1: i32, %arg2: i32) -> (i32, i32, i32) {
    %c0_i32 = arith.constant 0 : i32
    %c0_i32_0 = arith.constant 0 : i32
    return %arg0, %arg2, %c0_i32 : i32, i32, i32
  }
  func.func @transform_4(%arg0: i32, %arg1: i32, %arg2: i32) -> (i32, i32, i32) {
    %c0_i32 = arith.constant 0 : i32
    %c0_i32_0 = arith.constant 0 : i32
    return %arg0, %arg1, %c0_i32 : i32, i32, i32
  }
}

</mosaic_0001>

<bundles_post_ra>
// kernel: _lambda_.1
= control target key start
LH: loop header
LB: loop body
LE: loop exit
PB: predicated region body
PF: predicated region fallthrough
CT: control target
= control target key end

     0   :  { %s2542_s0 = inlined_call_operand.vmem [shape: f32[1,512], index: 0, kind: input, shape index: {}]   ;;  %s2543_s1 = inlined_call_operand.vmem [shape: bf16[2,256,48], index: 1, kind: input, shape index: {}]   ;;  %s2544_s2 = inlined_call_operand.vmem [shape: bf16[2,48,512], index: 2, kind: input, shape index: {}]   ;;  %s2545_s3 = inlined_call_operand.vmem [shape: bf16[2,512,128], index: 3, kind: input, shape index: {}]   ;;  %s2546_s4 = inlined_call_operand.vmem [shape: bf16[2,256,128], index: 4, kind: output, shape index: {}]  }
   0x1   :  { %2548 = sst [smem:[#allocation7_spill]] %s2544_s2 }
   0x2   :  { %s2073_s15 = smov 0   ;;  %s2075_s16 = smov 0  }
   0x3   :  { %s2077_s17 = smov 0   ;;  %s2079_s18 = smov 0  }
   0x4   :  { %s2081_s19 = smov 0   ;;  %s2083_s20 = smov 0  }
   0x5   :  { %s2085_s21 = smov 0   ;;  %s2087_s22 = smov 0  }
   0x6   :  { %s2089_s23 = smov 0  }
   0x7 LB: > { %s26_s24 = sadd.s32 1, %s2030_s20  ;;  %s29_s25 = sadd.s32 1, %s2034_s21  ;;  %s2042_s23 = sphi %s2089_s23, %s14_s23   ;;  %s2038_s22 = sphi %s2087_s22, %s2562_s22   ;;  %s2034_s21 = sphi %s2085_s21, %s2561_s21   ;;  %s2030_s20 = sphi %s2083_s20, %s2560_s20   ;;  %s2026_s19 = sphi %s2081_s19, %s2559_s19   ;;  %s2022_s18 = sphi %s2079_s18, %s2558_s18   ;;  %s2018_s17 = sphi %s2077_s17, %s2557_s17   ;;  %s2014_s16 = sphi %s2075_s16, %s2556_s16   ;;  %s2010_s15 = sphi %s2073_s15, %s2555_s15  }
   0x8   : > { %p27_p0 = scmp.ge.s32.totalorder %s26_s24, 4  ;;  %p103_p1 = scmp.ne.s32.totalorder %s2014_s16, %s2010_s15 }
   0x9   : > { %p104_p2 = scmp.eq.s32.totalorder %s2042_s23, 0  ;;  %s33_s26 = sadd.s32 1, %s2038_s22 }
   0xa   : > { %s2564_s24 = smov (%p27_p0, %s26_s24), 0  ;;  %s2566_s25 = smov (!%p27_p0, %s29_s25), %s2034_s21 }
   0xb   : > { %p31_p3 = scmp.ge.s32.totalorder %s2566_s25, 2  ;;  %p105_p4 = por %p104_p2, %p103_p1 }
   0xc   : > { %s92_s27 = ssub.s32 %s2030_s20, %s2564_s24  ;;  %s96_s30 = sadd.s32 1, %s2014_s16 }
   0xd   : > { %s2568_s25 = smov (%p31_p3, %s2566_s25), 0  ;;  %s2570_s26 = smov (!%p31_p3, %s33_s26), %s2038_s22 }
   0xe   : > { %2549 = sst [smem:[#allocation5_spill]] %s2568_s25  ;;  %p35_p5 = scmp.ge.s32.totalorder %s2570_s26, 2 }
   0xf   : > { %p1554_p7 = scmp.ge.s32.totalorder %s2042_s23, 16 }
  0x10   : > { %s2572_s26 = smov (%p35_p5, %s2570_s26), 0 }
  0x11   : > { %2550 = sst [smem:[#allocation6_spill]] %s2572_s26  ;;  %s91_s28 = ssub.s32 %s2038_s22, %s2572_s26 }
  0x12   : > { %s93_s29 = sor.u32 %s92_s27, %s91_s28  ;;  %185 = sbr.rel (%p1554_p7) target bundleno = 38 (0x26), region = 16 }
  0x13   : > { %p94_p6 = scmp.eq.s32.totalorder %s93_s29, 0 }
  0x15   : > { %s2138_s5 = scalar_select %p94_p6, %s2014_s16, %s96_s30  }
  0x19   : > { %207 = sbr.rel (!%p105_p4) target bundleno = 38 (0x26), region = 28  ;;  %s209_s6 = sand.u32 (%p105_p4), 1, %s2014_s16  }
  0x1a   : > { %s1775_s7 = smul.u32 (%p105_p4), 24, %s2038_s22  ;;  %s2551_s2 = sld [smem:[#allocation7_spill]] (%p105_p4) }
  0x1b   : > { %s1774_s8 = smul.u32 (%p105_p4), 24, %s209_s6 }
  0x1c   : > { %s213_s9 = sadd.s32 (%p105_p4), %s2030_s20, %s1775_s7 }
  0x1d   : > { %s1555_s10 = sshll.u32 (%p105_p4), %s213_s9, 2  ;;  %s211_s14 = scalar_lea.vmem (%p105_p4), [#allocation4], %s1774_s8 }
  0x20   : > { %s215_s13 = scalar_lea.vmem %s2551_s2, %s1555_s10 }
  0x21   : > { %v231_v0 = vld [vmem:[%s215_s13] sm:$0xf]  ;;  %v233_v1 = vld [vmem:[%s215_s13 + $0x10] sm:$0xf] }
  0x22   : > { %v235_v2 = vld [vmem:[%s215_s13 + $0x20] sm:$0xf]  ;;  %232 = vst [vmem:[%s211_s14] sm:$0xf] %v231_v0  ;;  %234 = vst [vmem:[%s211_s14 + $0x4] sm:$0xf] %v233_v1 }
  0x23   : > { %236 = vst [vmem:[%s211_s14 + $0x8] sm:$0xf] %v235_v2  ;;  %v237_v3 = vld [vmem:[%s215_s13 + $0x30] sm:$0xf]  ;;  %v239_v4 = vld [vmem:[%s215_s13 + $0x40] sm:$0xf] }
  0x24   : > { %v241_v5 = vld [vmem:[%s215_s13 + $0x50] sm:$0xf]  ;;  %238 = vst [vmem:[%s211_s14 + $0xc] sm:$0xf] %v237_v3  ;;  %240 = vst [vmem:[%s211_s14 + $0x10] sm:$0xf] %v239_v4 }
  0x25   : > { %242 = vst [vmem:[%s211_s14 + $0x14] sm:$0xf] %v241_v5 }
  0x26 PF: > { %p1556_p8 = scmp.ge.s32.totalorder %s2042_s23, 1  ;;  %p289_p9 = scmp.lt.s32.totalorder %s2042_s23, 17 }
  0x28   : > { %p290_p10 = pnand %p1556_p8, %p289_p9 }
  0x29   : > { %s296_s27 = sand.u32 (!%p290_p10), 1, %s2010_s15   ;;  %p346_p11 = scmp.lt.s32.totalorder (!%p290_p10), %s2018_s17, 3 }
  0x2a   : > { %293 = sbr.rel (%p290_p10) target bundleno = 1019 (0x3fb), region = 73  ;;  %s1557_s29 = sshll.u32 (!%p290_p10), %s2022_s18, 4 }
  0x2b   : > { %s1776_s28 = smul.u32 (!%p290_p10), 24, %s296_s27  ;;  %p350_p12 = scmp.lt.s32.totalorder (!%p290_p10), %s2026_s19, 1 }
  0x2c   : > { %p352_p13 = scmp.lt.s32.totalorder (!%p290_p10), %s1557_s29, 31  ;;  %s1560_s10 = sshll.u32 (!%p290_p10), %s2018_s17, 4 }
  0x2d   : > { %p362_p0 = scmp.lt.s32.totalorder (!%p290_p10), %s1560_s10, 63  ;;  %p1566_p1 = scmp.ne.s32.totalorder (!%p290_p10), %s2018_s17, 0 }
  0x31   : > { %s2153_s30 = scalar_select %p346_p11, %s2018_s17, 3 }
  0x32   : > { %s2574_s19 = smov (!%p350_p12, %s2026_s19), 1  ;;  %s2576_s29 = smov (!%p352_p13, %s1557_s29), 31 }
  0x33   : > { %s1558_s9 = sshll.u32 %s2574_s19, 5  ;;  %s1561_s15 = sshll.u32 %s2574_s19, 6  ;;  %vm384_vm0 = vcmask (!%p1566_p1), 7168   ;;  %v2044_v6 = vmov (!%p1566_p1), -1e+30   ;;  %v2045_v7 = vmov (!%p1566_p1), 0.0  }
  0x34   : > { %s355_s11 = sadd.s32 %s1558_s9, %s2576_s29  ;;  %s2578_s10 = smov (!%p362_p0, %s1560_s10), 63  ;;  %385 = vst.msk [vmem:[#allocation2] sm:$0xff] (!%p1566_p1), %vm384_vm0, %v2044_v6  ;;  %386 = vst.msk [vmem:[#allocation2 + $0x8] sm:$0xff] (!%p1566_p1), %vm384_vm0, %v2044_v6 }
  0x35   : > { %s1559_s12 = sshll.u32 %s355_s11, 2  ;;  %s365_s6 = sadd.s32 %s1561_s15, %s2578_s10  ;;  %387 = vst.msk [vmem:[#allocation2 + $0x10] sm:$0xff] (!%p1566_p1), %vm384_vm0, %v2044_v6  ;;  %388 = vst.msk [vmem:[#allocation2 + $0x18] sm:$0xff] (!%p1566_p1), %vm384_vm0, %v2044_v6 }
  0x36   : > { %s2165_s18 = scalar_lea.vmem %s2543_s1, %s1559_s12  ;;  %s2170_s26 = scalar_lea.vmem %s2546_s4, %s1559_s12  ;;  %389 = vst.msk [vmem:[#allocation2 + $0x20] sm:$0xff] (!%p1566_p1), %vm384_vm0, %v2044_v6  ;;  %390 = vst.msk [vmem:[#allocation2 + $0x28] sm:$0xff] (!%p1566_p1), %vm384_vm0, %v2044_v6 }
  0x37   : > { %s1562_s7 = sshll.u32 %s365_s6, 2  ;;  %s2177_s9 = scalar_lea.vmem [#allocation4], %s1776_s28  ;;  %391 = vst.msk [vmem:[#allocation2 + $0x30] sm:$0xff] (!%p1566_p1), %vm384_vm0, %v2044_v6  ;;  %392 = vst.msk [vmem:[#allocation2 + $0x38] sm:$0xff] (!%p1566_p1), %vm384_vm0, %v2044_v6 }
  0x38   : > { %s2175_s29 = scalar_lea.vmem %s2545_s3, %s1562_s7  ;;  %383 = sbr.rel (%p1566_p1) target bundleno = 68 (0x44), region = 81  ;;  %393 = vst.msk [vmem:[#allocation2 + $0x40] sm:$0xff] (!%p1566_p1), %vm384_vm0, %v2044_v6  ;;  %394 = vst.msk [vmem:[#allocation2 + $0x48] sm:$0xff] (!%p1566_p1), %vm384_vm0, %v2044_v6 }
  0x39   : > { %395 = vst.msk [vmem:[#allocation2 + $0x50] sm:$0xff] (!%p1566_p1), %vm384_vm0, %v2044_v6  ;;  %396 = vst.msk [vmem:[#allocation2 + $0x58] sm:$0xff] (!%p1566_p1), %vm384_vm0, %v2044_v6 }
  0x3a   : > { %397 = vst.msk [vmem:[#allocation2 + $0x60] sm:$0xff] (!%p1566_p1), %vm384_vm0, %v2044_v6  ;;  %398 = vst.msk [vmem:[#allocation2 + $0x68] sm:$0xff] (!%p1566_p1), %vm384_vm0, %v2044_v6 }
  0x3b   : > { %399 = vst.msk [vmem:[#allocation2 + $0x70] sm:$0xff] (!%p1566_p1), %vm384_vm0, %v2044_v6  ;;  %400 = vst.msk [vmem:[#allocation2 + $0x78] sm:$0xff] (!%p1566_p1), %vm384_vm0, %v2044_v6 }
  0x3c   : > { %401 = vst [vmem:[#allocation3] sm:$0xff] (!%p1566_p1), %v2045_v7  ;;  %402 = vst [vmem:[#allocation3 + $0x8] sm:$0xff] (!%p1566_p1), %v2045_v7 }
  0x3d   : > { %403 = vst [vmem:[#allocation3 + $0x10] sm:$0xff] (!%p1566_p1), %v2045_v7  ;;  %404 = vst [vmem:[#allocation3 + $0x18] sm:$0xff] (!%p1566_p1), %v2045_v7 }
  0x3e   : > { %405 = vst [vmem:[#allocation3 + $0x20] sm:$0xff] (!%p1566_p1), %v2045_v7  ;;  %406 = vst [vmem:[#allocation3 + $0x28] sm:$0xff] (!%p1566_p1), %v2045_v7 }
  0x3f   : > { %407 = vst [vmem:[#allocation3 + $0x30] sm:$0xff] %v2045_v7  ;;  %408 = vst [vmem:[#allocation3 + $0x38] sm:$0xff] %v2045_v7 }
  0x40   : > { %409 = vst [vmem:[#allocation3 + $0x40] sm:$0xff] %v2045_v7  ;;  %410 = vst [vmem:[#allocation3 + $0x48] sm:$0xff] %v2045_v7 }
  0x41   : > { %411 = vst [vmem:[#allocation3 + $0x50] sm:$0xff] %v2045_v7  ;;  %412 = vst [vmem:[#allocation3 + $0x58] sm:$0xff] %v2045_v7 }
  0x42   : > { %413 = vst [vmem:[#allocation3 + $0x60] sm:$0xff] %v2045_v7  ;;  %414 = vst [vmem:[#allocation3 + $0x68] sm:$0xff] %v2045_v7 }
  0x43   : > { %415 = vst [vmem:[#allocation3 + $0x70] sm:$0xff] %v2045_v7  ;;  %416 = vst [vmem:[#allocation3 + $0x78] sm:$0xff] %v2045_v7 }
  0x44 PF: > { %v1855_v8 = vld [vmem:[%s2177_s9] sm:$0xff]   ;;  %v1856_v9 = vld [vmem:[%s2177_s9 + $0x8] sm:$0xff]   ;;  %vm504_vm1 = vcmask 392192   ;;  %v1857_v11 = vld [vmem:[%s2177_s9 + $0x10] sm:$0xff]   ;;  %s2552_s25 = scalar_lea.vmem %s2542_s0, %s2153_s30  ;;  %v2046_v47 = vmov 0   ;;  %vm1179_vm2 = vcmask 7168  }
  0x45   : > { %1704 = vmatprep.subr.bf16.mxu0 %v1855_v8  ;;  %v1858_v10 = vld [vmem:[%s2165_s18] sm:$0xff]   ;;  %v1859_v12 = vld [vmem:[%s2165_s18 + $0x8] sm:$0xff]   ;;  %v1860_v13 = vld [vmem:[%s2165_s18 + $0x10] sm:$0xff]   ;;  %1854 = vset.pattern.permute.xlu1 %v2046_v47  ;;  %p1595_p2 = scmp.ne.s32.totalorder %s2018_s17, 3 }
  0x46   : > { %1705 = vmatpush3.bf16.msra.mxu0 %v1855_v8  ;;  %1710 = vmatprep.mubr.msk.bf16.mxu0 %vm504_vm1, %v1858_v10  ;;  %v1861_v14 = vld [vmem:[%s2165_s18 + $0x18] sm:$0xff]   ;;  %v1862_v15 = vld [vmem:[%s2165_s18 + $0x20] sm:$0xff]   ;;  %v1863_v16 = vld [vmem:[%s2165_s18 + $0x28] sm:$0xff]  }
  0x47   : > { %1706 = vmatprep.subr.bf16.mxu0 %v1856_v9  ;;  %v1864_v17 = vld [vmem:[%s2165_s18 + $0x30] sm:$0xff]   ;;  %v1865_v18 = vld [vmem:[%s2165_s18 + $0x38] sm:$0xff]   ;;  %v1567_v19 = vld [vmem:[%s2552_s25] ss:$0 sm:$0xff]  ;;  %1853 = vset.pattern.permute.xlu0 %v2046_v47 }
  0x48   : > { %v1866_v53 = vld [vmem:[%s2175_s29] sm:$0xff]   ;;  %v2271_v56 = vld [vmem:[#allocation2 + $0x8] sm:$0xff]  ;;  %v2283_v60 = vld [vmem:[#allocation2 + $0x30] sm:$0xff] }
  0x49   : > { %1758 = vmatprep.subr.bf16.mxu1 %v1866_v53  ;;  %v2269_v54 = vld [vmem:[#allocation2] sm:$0xff]  ;;  %v2293_v2 = vld [vmem:[#allocation2 + $0x38] sm:$0xff]  ;;  %v2298_v3 = vld [vmem:[#allocation2 + $0x28] sm:$0xff] }
  0x4a   : > { %1707 = vmatpush3.bf16.msra.mxu0 %v1856_v9  ;;  %1766 = vmatpush3.bf16.msra.mxu1 %v1866_v53  ;;  %v2285_v61 = vld [vmem:[#allocation2 + $0x20] sm:$0xff]  ;;  %v1867_v4 = vld [vmem:[%s2175_s29 + $0x8] sm:$0xff]   ;;  %v2310_v9 = vld [vmem:[#allocation2 + $0x18] sm:$0xff] }
  0x4b   : > { %1708 = vmatprep.subr.bf16.mxu0 %v1857_v11  ;;  %1759 = vmatprep.subr.bf16.mxu1 %v1867_v4  ;;  %v2315_v10 = vld [vmem:[#allocation2 + $0x50] sm:$0xff] }
  0x4e   : > { %1709 = vmatpush3.bf16.msra.mxu0 %v1857_v11  ;;  %1767 = vmatpush3.bf16.msra.mxu1 %v1867_v4  ;;  %v1868_v11 = vld [vmem:[%s2175_s29 + $0x10] sm:$0xff]  }
  0x4f   : > { %1726 = vmatprep.subr.bf16.mxu0 %v1866_v53  ;;  %1760 = vmatprep.subr.bf16.mxu1 %v1868_v11 }
  0x51   : > { %1711 = vmatmul.mubr.msk.bf16.vlgmr.msra.gmra.mrb[0].mxu0 %vm504_vm1, %v1859_v12 }
  0x52   : > { %1714 = vmatprep.mubr.msk.bf16.mxu0 %vm504_vm1, %v1860_v13  ;;  %1727 = vmatpush3.bf16.msra.mxu0 %v1866_v53 }
  0x53   : > { %1728 = vmatprep.subr.bf16.mxu0 %v1867_v4  ;;  %1768 = vmatpush3.bf16.msra.mxu1 %v1868_v11 }
  0x56   : > { %1729 = vmatpush3.bf16.msra.mxu0 %v1867_v4 }
  0x57   : > { %1730 = vmatprep.subr.bf16.mxu0 %v1868_v11 }
  0x59   : > { %1715 = vmatmul.mubr.msk.bf16.gmra.mrb[4].mxu0 %vm504_vm1, %v1861_v14 }
  0x5a   : > { %1718 = vmatprep.mubr.msk.bf16.mxu0 %vm504_vm1, %v1862_v15  ;;  %1731 = vmatpush3.bf16.msra.mxu0 %v1868_v11 }
  0x61   : > { %1719 = vmatmul.mubr.msk.bf16.gmra.mrb[8].mxu0 %vm504_vm1, %v1863_v16  ;;  %v2325_v16 = vld [vmem:[#allocation2 + $0x58] sm:$0xff] }
  0x62   : > { %1722 = vmatprep.mubr.msk.bf16.mxu0 %vm504_vm1, %v1864_v17  ;;  %v2329_v17 = vld [vmem:[#allocation2 + $0x40] sm:$0xff] }
  0x69   : > { %1723 = vmatmul.mubr.msk.bf16.gmra.mrb[12].mxu0 %vm504_vm1, %v1865_v18  ;;  %v1869_v18 = vld [vmem:[%s2175_s29 + $0x18] sm:$0xff]  }
  0x6a   : > { %1761 = vmatprep.subr.bf16.mxu1 %v1869_v18  ;;  %1732 = vmatprep.subr.bf16.mxu0 %v1869_v18 }
  0x6b   : > { %1769 = vmatpush3.bf16.msra.mxu1 %v1869_v18  ;;  %1733 = vmatpush3.bf16.msra.mxu0 %v1869_v18 }
 0x124   : > { %v1712_v20 = vpop.f32.mrb[0].mxu0 }
 0x125   : > { %v563_v21 = vpop.f32.mrb[1].mxu0  ;;  %v2252_v45 = vadd.f32 %v1712_v20, %v1567_v19 }
 0x126   : > { %v2220_v22 = vadd.f32 %v1567_v19, %v563_v21  ;;  %v1713_v23 = vpop.f32.mrb[2].mxu0 }
 0x127   : > { %v566_v24 = vpop.f32.mrb[3].mxu0  ;;  %v2238_v35 = vadd.f32 %v1713_v23, %v1567_v19 }
 0x128   : > { %v2222_v25 = vadd.f32 %v1567_v19, %v566_v24  ;;  %642 = vmax.xlane.f32.xlu0 %v2220_v22  ;;  %v2340_v24 = vld [vmem:[#allocation2 + $0x48] sm:$0xff] }
 0x12a   : > { %644 = vmax.xlane.f32.xlu1 %v2222_v25 }
 0x12c   : > { %v1716_v26 = vpop.f32.mrb[4].mxu0 }
 0x12d   : > { %v2226_v27 = vadd.f32 %v1716_v26, %v1567_v19  ;;  %v579_v28 = vpop.f32.mrb[5].mxu0  ;;  %v2345_v26 = vld [vmem:[#allocation2 + $0x10] sm:$0xff] }
 0x12e   : > { %v2228_v29 = vadd.f32 %v1567_v19, %v579_v28  ;;  %v1717_v30 = vpop.f32.mrb[6].mxu0  ;;  %v1870_v28 = vld [vmem:[%s2175_s29 + $0x20] sm:$0xff]  }
 0x12f   : > { %v582_v31 = vpop.f32.mrb[7].mxu0  ;;  %654 = vmax.xlane.f32.xlu1 %v2226_v27  ;;  %v2232_v32 = vadd.f32 %v1717_v30, %v1567_v19  ;;  %1762 = vmatprep.subr.bf16.mxu1 %v1870_v28 }
 0x130   : > { %650 = vmax.xlane.f32.xlu0 %v2228_v29  ;;  %v2234_v33 = vadd.f32 %v1567_v19, %v582_v31  ;;  %1734 = vmatprep.subr.bf16.mxu0 %v1870_v28 }
 0x131   : > { %1770 = vmatpush3.bf16.msra.mxu1 %v1870_v28  ;;  %1735 = vmatpush3.bf16.msra.mxu0 %v1870_v28 }
 0x133   : > { %656 = vmax.xlane.f32.xlu1 %v2232_v32 }
 0x134   : > { %652 = vmax.xlane.f32.xlu0 %v2234_v33  ;;  %v1720_v34 = vpop.f32.mrb[8].mxu0 }
 0x135   : > { %v2240_v36 = vadd.f32 %v1720_v34, %v1567_v19  ;;  %v595_v37 = vpop.f32.mrb[9].mxu0 }
 0x136   : > { %v1721_v38 = vpop.f32.mrb[10].mxu0  ;;  %v2245_v41 = vadd.f32 %v1567_v19, %v595_v37 }
 0x137   : > { %648 = vmax.xlane.f32.xlu1 %v2238_v35  ;;  %v2243_v39 = vadd.f32 %v1721_v38, %v1567_v19  ;;  %v598_v40 = vpop.f32.mrb[11].mxu0 }
 0x138   : > { %662 = vmax.xlane.f32.xlu0 %v2240_v36  ;;  %v2249_v42 = vadd.f32 %v1567_v19, %v598_v40  ;;  %v2358_v40 = vld [vmem:[#allocation2 + $0x78] sm:$0xff] }
 0x13b   : > { %664 = vmax.xlane.f32.xlu1 %v2243_v39 }
 0x13c   : > { %658 = vmax.xlane.f32.xlu0 %v2245_v41  ;;  %v1724_v43 = vpop.f32.mrb[12].mxu0 }
 0x13d   : > { %v611_v44 = vpop.f32.mrb[13].mxu0  ;;  %v2263_v52 = vadd.f32 %v1724_v43, %v1567_v19  ;;  %v2363_v43 = vld [vmem:[#allocation2 + $0x60] sm:$0xff] }
 0x13e   : > { %v1725_v46 = vpop.f32.mrb[14].mxu0  ;;  %v2257_v50 = vadd.f32 %v1567_v19, %v611_v44  ;;  %v1871_v44 = vld [vmem:[%s2175_s29 + $0x28] sm:$0xff]  }
 0x13f   : > { %660 = vmax.xlane.f32.xlu1 %v2249_v42  ;;  %v2255_v48 = vadd.f32 %v1725_v46, %v1567_v19  ;;  %v614_v49 = vpop.f32.mrb[15].mxu0  ;;  %1763 = vmatprep.subr.bf16.mxu1 %v1871_v44 }
 0x140   : > { %646 = vmax.xlane.f32.xlu0 %v2252_v45  ;;  %v2261_v51 = vadd.f32 %v1567_v19, %v614_v49  ;;  %1736 = vmatprep.subr.bf16.mxu0 %v1871_v44 }
 0x141   : > { %1771 = vmatpush3.bf16.msra.mxu1 %v1871_v44  ;;  %1737 = vmatpush3.bf16.msra.mxu0 %v1871_v44 }
 0x143   : > { %672 = vmax.xlane.f32.xlu1 %v2255_v48 }
 0x144   : > { %666 = vmax.xlane.f32.xlu0 %v2257_v50 }
 0x147   : > { %668 = vmax.xlane.f32.xlu1 %v2261_v51 }
 0x148   : > { %670 = vmax.xlane.f32.xlu0 %v2263_v52 }
 0x1b5   : > { %v643_v55 = vpop.xlane.xlu0 %642 }
 0x1b6   : > { %v2274_v57 = vmax.f32 %v2269_v54, %v643_v55 }
 0x1b7   : > { %v645_v58 = vpop.xlane.xlu1 %644 }
 0x1b8   : > { %1180 = vst.msk [vmem:[#allocation2] sm:$0xff] %vm1179_vm2, %v2274_v57  ;;  %v2279_v59 = vmax.f32 %v2271_v56, %v645_v58 }
 0x1ba   : > { %1181 = vst.msk [vmem:[#allocation2 + $0x8] sm:$0xff] %vm1179_vm2, %v2279_v59  ;;  %v691_v30 = vsub.f32 %v2271_v56, %v2279_v59  ;;  %v2372_v56 = vld [vmem:[#allocation2 + $0x68] sm:$0xff] }
 0x1bc   : > { %v655_v62 = vpop.xlane.xlu1 %654  ;;  %v708_v46 = vmul.f32 1.442695, %v691_v30 }
 0x1bd   : > { %v2288_v63 = vmax.f32 %v2283_v60, %v655_v62  ;;  %v651_v0 = vpop.xlane.xlu0 %650  ;;  %v1872_v62 = vld [vmem:[%s2175_s29 + $0x30] sm:$0xff]  }
 0x1be   : > { %v2291_v1 = vmax.f32 %v2285_v61, %v651_v0  ;;  %1874 = vpow2.f32 %v708_v46  ;;  %1764 = vmatprep.subr.bf16.mxu1 %v1872_v62  ;;  %1738 = vmatprep.subr.bf16.mxu0 %v1872_v62 }
 0x1bf   : > { %1186 = vst.msk [vmem:[#allocation2 + $0x30] sm:$0xff] %vm1179_vm2, %v2288_v63  ;;  %770 = vperm.xlu1 %1854, %v2288_v63   ;;  %1772 = vmatpush3.bf16.msra.mxu1 %v1872_v62 }
 0x1c0   : > { %1184 = vst.msk [vmem:[#allocation2 + $0x20] sm:$0xff] %vm1179_vm2, %v2291_v1  ;;  %v657_v5 = vpop.xlane.xlu1 %656  ;;  %760 = vperm.xlu0 %1853, %v2291_v1   ;;  %1739 = vmatpush3.bf16.msra.mxu0 %v1872_v62  ;;  %v694_v18 = vsub.f32 %v2285_v61, %v2291_v1 }
 0x1c1   : > { %v2305_v6 = vmax.f32 %v2293_v2, %v657_v5  ;;  %v653_v7 = vpop.xlane.xlu0 %652 }
 0x1c2   : > { %v2308_v8 = vmax.f32 %v2298_v3, %v653_v7  ;;  %v714_v28 = vmul.f32 1.442695, %v694_v18 }
 0x1c3   : > { %1187 = vst.msk [vmem:[#allocation2 + $0x38] sm:$0xff] %vm1179_vm2, %v2305_v6  ;;  %740 = vperm.xlu1 %1854, %v2274_v57  }
 0x1c4   : > { %1185 = vst.msk [vmem:[#allocation2 + $0x28] sm:$0xff] %vm1179_vm2, %v2308_v8  ;;  %v649_v12 = vpop.xlane.xlu1 %648  ;;  %745 = vperm.xlu0 %1853, %v2279_v59   ;;  %v2380_v59 = vld [vmem:[#allocation2 + $0x70] sm:$0xff]  ;;  %v695_v0 = vsub.f32 %v2298_v3, %v2308_v8  ;;  %v697_v3 = vsub.f32 %v2293_v2, %v2305_v6 }
 0x1c5   : > { %v677_v13 = vmax.f32 %v2310_v9, %v649_v12  ;;  %v663_v14 = vpop.xlane.xlu0 %662  ;;  %v690_v12 = vsub.f32 %v2269_v54, %v2274_v57 }
 0x1c6   : > { %v2323_v15 = vmax.f32 %v2315_v10, %v663_v14  ;;  %v720_v57 = vmul.f32 1.442695, %v697_v3 }
 0x1c7   : > { %1183 = vst.msk [vmem:[#allocation2 + $0x18] sm:$0xff] %vm1179_vm2, %v677_v13  ;;  %775 = vperm.xlu1 %1854, %v2305_v6   ;;  %v693_v47 = vsub.f32 %v2310_v9, %v677_v13  ;;  %v706_v14 = vmul.f32 1.442695, %v690_v12 }
 0x1c8   : > { %1190 = vst.msk [vmem:[#allocation2 + $0x50] sm:$0xff] %vm1179_vm2, %v2323_v15  ;;  %v665_v19 = vpop.xlane.xlu1 %664  ;;  %755 = vperm.xlu0 %1853, %v677_v13   ;;  %v1873_v13 = vld [vmem:[%s2175_s29 + $0x38] sm:$0xff]   ;;  %v1875_v6 = vpop.eup %1874 }
 0x1c9   : > { %v2335_v20 = vmax.f32 %v2325_v16, %v665_v19  ;;  %v659_v21 = vpop.xlane.xlu0 %658  ;;  %v712_v4 = vmul.f32 1.442695, %v693_v47  ;;  %1765 = vmatprep.subr.bf16.mxu1 %v1873_v13  ;;  %1740 = vmatprep.subr.bf16.mxu0 %v1873_v13 }
 0x1ca   : > { %v2338_v23 = vmax.f32 %v2329_v17, %v659_v21  ;;  %1773 = vmatpush3.bf16.msra.mxu1 %v1873_v13  ;;  %1741 = vmatpush3.bf16.msra.mxu0 %v1873_v13 }
 0x1cb   : > { %1191 = vst.msk [vmem:[#allocation2 + $0x58] sm:$0xff] %vm1179_vm2, %v2335_v20  ;;  %765 = vperm.xlu1 %1854, %v2308_v8   ;;  %v716_v8 = vmul.f32 1.442695, %v695_v0  ;;  %1876 = vpow2.f32 %v712_v4  ;;  %v701_v54 = vsub.f32 %v2325_v16, %v2335_v20 }
 0x1cc   : > { %1188 = vst.msk [vmem:[#allocation2 + $0x40] sm:$0xff] %vm1179_vm2, %v2338_v23  ;;  %v661_v31 = vpop.xlane.xlu1 %660  ;;  %v698_v44 = vsub.f32 %v2329_v17, %v2338_v23 }
 0x1cd   : > { %v2353_v34 = vmax.f32 %v2340_v24, %v661_v31  ;;  %v647_v37 = vpop.xlane.xlu0 %646  ;;  %1878 = vpow2.f32 %v716_v8  ;;  %v728_v19 = vmul.f32 1.442695, %v701_v54 }
 0x1ce   : > { %v2356_v38 = vmax.f32 %v2345_v26, %v647_v37  ;;  %1880 = vpow2.f32 %v706_v14  ;;  %v722_v47 = vmul.f32 1.442695, %v698_v44 }
 0x1cf   : > { %1189 = vst.msk [vmem:[#allocation2 + $0x48] sm:$0xff] %vm1179_vm2, %v2353_v34  ;;  %790 = vperm.xlu1 %1854, %v2323_v15   ;;  %1882 = vpow2.f32 %v720_v57  ;;  %v699_v16 = vsub.f32 %v2340_v24, %v2353_v34  ;;  %v700_v24 = vsub.f32 %v2315_v10, %v2323_v15 }
 0x1d0   : > { %1182 = vst.msk [vmem:[#allocation2 + $0x10] sm:$0xff] %vm1179_vm2, %v2356_v38  ;;  %v673_v49 = vpop.xlane.xlu1 %672  ;;  %v692_v2 = vsub.f32 %v2345_v26, %v2356_v38  ;;  %v696_v26 = vsub.f32 %v2283_v60, %v2288_v63  ;;  %1884 = vpow2.f32 %v728_v19 }
 0x1d1   : > { %v2370_v53 = vmax.f32 %v2358_v40, %v673_v49  ;;  %v667_v55 = vpop.xlane.xlu0 %666  ;;  %v724_v30 = vmul.f32 1.442695, %v699_v16 }
 0x1d2   : > { %v2375_v58 = vmax.f32 %v2363_v43, %v667_v55  ;;  %v718_v31 = vmul.f32 1.442695, %v696_v26 }
 0x1d3   : > { %1195 = vst.msk [vmem:[#allocation2 + $0x78] sm:$0xff] %vm1179_vm2, %v2370_v53  ;;  %780 = vperm.xlu1 %1854, %v2338_v23   ;;  %v705_v60 = vsub.f32 %v2358_v40, %v2370_v53 }
 0x1d4   : > { %v669_v5 = vpop.xlane.xlu1 %668  ;;  %1192 = vst.msk [vmem:[#allocation2 + $0x60] sm:$0xff] %vm1179_vm2, %v2375_v58  ;;  %v702_v40 = vsub.f32 %v2363_v43, %v2375_v58 }
 0x1d5   : > { %v687_v7 = vmax.f32 %v2372_v56, %v669_v5  ;;  %v671_v9 = vpop.xlane.xlu0 %670  ;;  %v1877_v21 = vpop.eup %1876  ;;  %v736_v46 = vmul.f32 1.442695, %v705_v60 }
 0x1d6   : > { %v2389_v11 = vmax.f32 %v2380_v59, %v671_v9  ;;  %v730_v55 = vmul.f32 1.442695, %v702_v40 }
 0x1d7   : > { %1193 = vst.msk [vmem:[#allocation2 + $0x68] sm:$0xff] %vm1179_vm2, %v687_v7  ;;  %805 = vperm.xlu0 %1853, %v687_v7   ;;  %795 = vperm.xlu1 %1854, %v2335_v20   ;;  %v710_v20 = vmul.f32 1.442695, %v692_v2  ;;  %v703_v61 = vsub.f32 %v2372_v56, %v687_v7  ;;  %v1879_v1 = vpop.eup %1878 }
 0x1d8   : > { %1194 = vst.msk [vmem:[#allocation2 + $0x70] sm:$0xff] %vm1179_vm2, %v2389_v11  ;;  %v704_v17 = vsub.f32 %v2380_v59, %v2389_v11 }
 0x1d9   : > { %1886 = vpow2.f32 %v710_v20  ;;  %v732_v63 = vmul.f32 1.442695, %v703_v61 }
 0x1da   : > { %1888 = vpow2.f32 %v714_v28  ;;  %v734_v62 = vmul.f32 1.442695, %v704_v17 }
 0x1db   : > { %815 = vperm.xlu0 %1853, %v2370_v53   ;;  %785 = vperm.xlu1 %1854, %v2353_v34   ;;  %1890 = vpow2.f32 %v724_v30  ;;  %v1881_v34 = vpop.eup %1880 }
 0x1dc   : > { %v1883_v37 = vpop.eup %1882  ;;  %1892 = vpow2.f32 %v718_v31 }
 0x1dd   : > { %1894 = vpow2.f32 %v732_v63  ;;  %v1885_v10 = vpop.eup %1884 }
 0x1df   : > { %889 = vperm.xlu0 %1853, %v1875_v6   ;;  %750 = vperm.xlu1 %1854, %v2356_v38   ;;  %v726_v38 = vmul.f32 1.442695, %v700_v24 }
 0x1e1   : > { %1896 = vpow2.f32 %v726_v38 }
 0x1e2   : > { %1898 = vpow2.f32 %v736_v46 }
 0x1e3   : > { %899 = vperm.xlu0 %1853, %v1877_v21   ;;  %800 = vperm.xlu1 %1854, %v2375_v58   ;;  %v1887_v15 = vpop.eup %1886  ;;  %1900 = vpow2.f32 %v722_v47 }
 0x1e4   : > { %v1889_v49 = vpop.eup %1888  ;;  %1902 = vpow2.f32 %v730_v55 }
 0x1e5   : > { %v1891_v53 = vpop.eup %1890  ;;  %1904 = vpow2.f32 %v734_v62 }
 0x1e6   : > { %v1893_v23 = vpop.eup %1892 }
 0x1e7   : > { %909 = vperm.xlu0 %1853, %v1879_v1   ;;  %810 = vperm.xlu1 %1854, %v2389_v11   ;;  %v1895_v56 = vpop.eup %1894 }
 0x1eb   : > { %919 = vperm.xlu0 %1853, %v1883_v37   ;;  %884 = vperm.xlu1 %1854, %v1881_v34   ;;  %v1897_v0 = vpop.eup %1896 }
 0x1ec   : > { %v1899_v4 = vpop.eup %1898 }
 0x1ed   : > { %v1901_v43 = vpop.eup %1900 }
 0x1ee   : > { %v1903_v58 = vpop.eup %1902 }
 0x1ef   : > { %939 = vperm.xlu0 %1853, %v1885_v10   ;;  %894 = vperm.xlu1 %1854, %v1887_v15   ;;  %v1905_v5 = vpop.eup %1904 }
 0x1f3   : > { %929 = vperm.xlu0 %1853, %v1891_v53   ;;  %904 = vperm.xlu1 %1854, %v1889_v49  }
 0x1f7   : > { %949 = vperm.xlu0 %1853, %v1895_v56   ;;  %914 = vperm.xlu1 %1854, %v1893_v23  }
 0x1fb   : > { %959 = vperm.xlu0 %1853, %v1899_v4   ;;  %934 = vperm.xlu1 %1854, %v1897_v0  }
 0x1ff   : > { %924 = vperm.xlu1 %1854, %v1901_v43  }
 0x203   : > { %944 = vperm.xlu1 %1854, %v1903_v58  }
 0x207   : > { %954 = vperm.xlu1 %1854, %v1905_v5  }
 0x23e   : > { %v771_v7 = vpop.permute.xlu1 %770 }
 0x23f   : > { %v761_v9 = vpop.permute.xlu0 %760  ;;  %v824_v2 = vsub.f32 %v2226_v27, %v771_v7 }
 0x240   : > { %v822_v8 = vsub.f32 %v2228_v29, %v761_v9 }
 0x242   : > { %v741_v59 = vpop.permute.xlu1 %740  ;;  %v842_v6 = vmul.f32 1.442695, %v822_v8 }
 0x243   : > { %v818_v11 = vsub.f32 %v2220_v22, %v741_v59  ;;  %v746_v12 = vpop.permute.xlu0 %745  ;;  %v846_v22 = vmul.f32 1.442695, %v824_v2 }
 0x244   : > { %v819_v3 = vsub.f32 %v2222_v25, %v746_v12 }
 0x245   : > { %v834_v13 = vmul.f32 1.442695, %v818_v11 }
 0x246   : > { %v836_v14 = vmul.f32 1.442695, %v819_v3  ;;  %v776_v54 = vpop.permute.xlu1 %775 }
 0x247   : > { %1906 = vpow2.f32 %v834_v13  ;;  %v825_v57 = vsub.f32 %v2232_v32, %v776_v54  ;;  %v756_v32 = vpop.permute.xlu0 %755 }
 0x248   : > { %1908 = vpow2.f32 %v836_v14  ;;  %v821_v37 = vsub.f32 %v2238_v35, %v756_v32 }
 0x249   : > { %v848_v18 = vmul.f32 1.442695, %v825_v57  ;;  %1910 = vpow2.f32 %v842_v6 }
 0x24a   : > { %v766_v19 = vpop.permute.xlu1 %765 }
 0x24b   : > { %v823_v16 = vsub.f32 %v2234_v33, %v766_v19  ;;  %1912 = vpow2.f32 %v848_v18  ;;  %v872_v19 = vld [vmem:[#allocation3 + $0x30] sm:$0xff] }
 0x24d   : > { %v844_v20 = vmul.f32 1.442695, %v823_v16 }
 0x24e   : > { %v791_v25 = vpop.permute.xlu1 %790 }
 0x24f   : > { %1914 = vpow2.f32 %v844_v20  ;;  %v828_v31 = vsub.f32 %v2240_v36, %v791_v25  ;;  %v873_v20 = vld [vmem:[#allocation3 + $0x38] sm:$0xff] }
 0x250   : > { %1916 = vpow2.f32 %v846_v22  ;;  %v870_v22 = vld [vmem:[#allocation3 + $0x20] sm:$0xff] }
 0x251   : > { %v1907_v29 = vpop.eup %1906  ;;  %v854_v15 = vmul.f32 1.442695, %v828_v31 }
 0x252   : > { %v1909_v21 = vpop.eup %1908  ;;  %v781_v26 = vpop.permute.xlu1 %780 }
 0x253   : > { %v978_v28 = vpack.c.bf16 %v1909_v21, %v1907_v29  ;;  %v826_v27 = vsub.f32 %v2245_v41, %v781_v26  ;;  %v1911_v61 = vpop.eup %1910  ;;  %v871_v29 = vld [vmem:[#allocation3 + $0x28] sm:$0xff] }
 0x255   : > { %1742 = vmatprep.mubr.bf16.mxu0 %v978_v28  ;;  %v1913_v33 = vpop.eup %1912  ;;  %v850_v60 = vmul.f32 1.442695, %v826_v27 }
 0x256   : > { %v796_v30 = vpop.permute.xlu1 %795  ;;  %v806_v63 = vpop.permute.xlu0 %805 }
 0x257   : > { %v829_v1 = vsub.f32 %v2243_v39, %v796_v30  ;;  %1918 = vpow2.f32 %v850_v60  ;;  %v840_v39 = vmul.f32 1.442695, %v821_v37  ;;  %v831_v36 = vsub.f32 %v2261_v51, %v806_v63 }
 0x259   : > { %v1915_v24 = vpop.eup %1914  ;;  %v856_v38 = vmul.f32 1.442695, %v829_v1  ;;  %v860_v55 = vmul.f32 1.442695, %v831_v36 }
 0x25a   : > { %v1917_v34 = vpop.eup %1916  ;;  %v786_v44 = vpop.permute.xlu1 %785  ;;  %v980_v46 = vpack.c.bf16 %v1915_v24, %v1911_v61 }
 0x25b   : > { %v827_v10 = vsub.f32 %v2249_v42, %v786_v44  ;;  %v981_v41 = vpack.c.bf16 %v1913_v33, %v1917_v34  ;;  %1920 = vpow2.f32 %v856_v38  ;;  %v816_v49 = vpop.permute.xlu0 %815  ;;  %v876_v44 = vld [vmem:[#allocation3 + $0x50] sm:$0xff] }
 0x25c   : > { %1746 = vmatprep.mubr.bf16.mxu1 %v980_v46  ;;  %v833_v42 = vsub.f32 %v2255_v48, %v816_v49  ;;  %v874_v46 = vld [vmem:[#allocation3 + $0x40] sm:$0xff]  ;;  %v869_v49 = vld [vmem:[#allocation3 + $0x18] sm:$0xff] }
 0x25d   : > { %v852_v47 = vmul.f32 1.442695, %v827_v10  ;;  %1747 = vmatmul.mubr.bf16.vlgmr.msra.gmra.mrb[0].mxu1 %v981_v41  ;;  %v877_v10 = vld [vmem:[#allocation3 + $0x58] sm:$0xff]  ;;  %v868_v41 = vld [vmem:[#allocation3 + $0x10] sm:$0xff] }
 0x25e   : > { %v751_v40 = vpop.permute.xlu1 %750  ;;  %v864_v62 = vmul.f32 1.442695, %v833_v42 }
 0x25f   : > { %1922 = vpow2.f32 %v852_v47  ;;  %v820_v35 = vsub.f32 %v2252_v45, %v751_v40  ;;  %v890_v54 = vpop.permute.xlu0 %889 }
 0x260   : > { %1924 = vpow2.f32 %v854_v15  ;;  %v875_v15 = vld [vmem:[#allocation3 + $0x48] sm:$0xff] }
 0x261   : > { %v838_v53 = vmul.f32 1.442695, %v820_v35  ;;  %1926 = vpow2.f32 %v840_v39  ;;  %v1919_v51 = vpop.eup %1918  ;;  %v866_v39 = vld [vmem:[#allocation3] sm:$0xff] }
 0x262   : > { %v801_v17 = vpop.permute.xlu1 %800 }
 0x263   : > { %1928 = vpow2.f32 %v838_v53  ;;  %v830_v23 = vsub.f32 %v2257_v50, %v801_v17  ;;  %v900_v2 = vpop.permute.xlu0 %899  ;;  %v867_v17 = vld [vmem:[#allocation3 + $0x8] sm:$0xff] }
 0x264   : > { %1930 = vpow2.f32 %v860_v55 }
 0x265   : > { %v858_v56 = vmul.f32 1.442695, %v830_v23  ;;  %v1921_v43 = vpop.eup %1920 }
 0x266   : > { %v811_v0 = vpop.permute.xlu1 %810 }
 0x267   : > { %1932 = vpow2.f32 %v858_v56  ;;  %v832_v4 = vsub.f32 %v2263_v52, %v811_v0  ;;  %v910_v18 = vpop.permute.xlu0 %909 }
 0x268   : > { %1934 = vpow2.f32 %v864_v62  ;;  %v967_v61 = vmul.f32 %v910_v18, %v871_v29 }
 0x269   : > { %v1923_v45 = vpop.eup %1922  ;;  %v862_v58 = vmul.f32 1.442695, %v832_v4 }
 0x26a   : > { %v1925_v5 = vpop.eup %1924  ;;  %v982_v7 = vpack.c.bf16 %v1923_v45, %v1919_v51  ;;  %v885_v14 = vpop.permute.xlu1 %884 }
 0x26b   : > { %1936 = vpow2.f32 %v862_v58  ;;  %v983_v48 = vpack.c.bf16 %v1921_v43, %v1925_v5  ;;  %v1927_v9 = vpop.eup %1926  ;;  %v920_v25 = vpop.permute.xlu0 %919  ;;  %v962_v4 = vmul.f32 %v885_v14, %v866_v39  ;;  %v965_v5 = vmul.f32 %v900_v2, %v869_v49  ;;  %v878_v14 = vld [vmem:[#allocation3 + $0x60] sm:$0xff] }
 0x26c   : > { %1750 = vmatprep.mubr.bf16.mxu1 %v982_v7  ;;  %v969_v32 = vmul.f32 %v920_v25, %v873_v20 }
 0x26d   : > { %v1929_v59 = vpop.eup %1928  ;;  %1751 = vmatmul.mubr.bf16.gmra.mrb[4].mxu1 %v983_v48 }
 0x26e   : > { %v979_v50 = vpack.c.bf16 %v1927_v9, %v1929_v59  ;;  %v1931_v11 = vpop.eup %1930  ;;  %v895_v57 = vpop.permute.xlu1 %894  ;;  %v963_v59 = vmul.f32 %v890_v54, %v867_v17 }
 0x26f   : > { %v940_v34 = vpop.permute.xlu0 %939  ;;  %v964_v23 = vmul.f32 %v895_v57, %v868_v41  ;;  %v881_v57 = vld [vmem:[#allocation3 + $0x78] sm:$0xff] }
 0x270   : > { %1743 = vmatmul.mubr.bf16.vlgmr.msra.gmra.mrb[16].mxu0 %v979_v50  ;;  %v973_v35 = vmul.f32 %v940_v34, %v877_v10 }
 0x271   : > { %v1933_v12 = vpop.eup %1932 }
 0x272   : > { %v984_v3 = vpack.c.bf16 %v1931_v11, %v1933_v12  ;;  %v1935_v8 = vpop.eup %1934  ;;  %v905_v6 = vpop.permute.xlu1 %904 }
 0x273   : > { %v966_v26 = vmul.f32 %v905_v6, %v870_v22  ;;  %v930_v38 = vpop.permute.xlu0 %929  ;;  %v879_v6 = vld [vmem:[#allocation3 + $0x68] sm:$0xff] }
 0x274   : > { %1754 = vmatprep.mubr.bf16.mxu1 %v984_v3  ;;  %v971_v56 = vmul.f32 %v930_v38, %v875_v15 }
 0x275   : > { %v1937_v52 = vpop.eup %1936 }
 0x276   : > { %v985_v13 = vpack.c.bf16 %v1935_v8, %v1937_v52  ;;  %v915_v16 = vpop.permute.xlu1 %914  ;;  %v880_v8 = vld [vmem:[#allocation3 + $0x70] sm:$0xff] }
 0x277   : > { %v968_v21 = vmul.f32 %v915_v16, %v872_v19  ;;  %v950_v62 = vpop.permute.xlu0 %949 }
 0x278   : > { %1755 = vmatmul.mubr.bf16.gmra.mrb[8].mxu1 %v985_v13  ;;  %v975_v25 = vmul.f32 %v950_v62, %v879_v6 }
 0x27a   : > { %v935_v63 = vpop.permute.xlu1 %934 }
 0x27b   : > { %v972_v47 = vmul.f32 %v935_v63, %v876_v44  ;;  %v960_v2 = vpop.permute.xlu0 %959 }
 0x27c   : > { %v977_v16 = vmul.f32 %v960_v2, %v881_v57 }
 0x27e   : > { %v925_v37 = vpop.permute.xlu1 %924 }
 0x27f   : > { %v970_v36 = vmul.f32 %v925_v37, %v874_v46 }
 0x282   : > { %v945_v53 = vpop.permute.xlu1 %944 }
 0x283   : > { %v974_v19 = vmul.f32 %v945_v53, %v878_v14 }
 0x286   : > { %v955_v52 = vpop.permute.xlu1 %954 }
 0x287   : > { %v976_v18 = vmul.f32 %v955_v52, %v880_v8 }
 0x330   : > { %v1748_v28 = vpop.f32.mrb[0].mxu1 }
 0x331   : > { %v1153_v27 = vadd.f32 %v1748_v28, %v968_v21  ;;  %v1100_v30 = vpop.f32.mrb[1].mxu1 }
 0x332   : > { %v1151_v1 = vadd.f32 %v1100_v30, %v966_v26  ;;  %v1749_v33 = vpop.f32.mrb[2].mxu1 }
 0x333   : > { %1169 = vst [vmem:[#allocation3 + $0x30] sm:$0xff] %v1153_v27  ;;  %v1154_v31 = vadd.f32 %v1749_v33, %v969_v32  ;;  %v1103_v24 = vpop.f32.mrb[3].mxu1 }
 0x334   : > { %1167 = vst [vmem:[#allocation3 + $0x20] sm:$0xff] %v1151_v1  ;;  %v1152_v60 = vadd.f32 %v1103_v24, %v967_v61  ;;  %v2047_v1 = vmov (!%p1595_p2), 127  }
 0x335   : > { %1170 = vst [vmem:[#allocation3 + $0x38] sm:$0xff] %v1154_v31  ;;  %1939 = vset.pattern.permute.xlu1 (!%p1595_p2), %v2047_v1  ;;  %1938 = vset.pattern.permute.xlu0 (!%p1595_p2), %v2047_v1 }
 0x336   : > { %1168 = vst [vmem:[#allocation3 + $0x28] sm:$0xff] %v1152_v60 }
 0x33a   : > { %v2463_v63 = vld [vmem:[#allocation3 + $0x30] sm:$0xff] (!%p1595_p2) }
 0x33b   : > { %v2457_v24 = vld [vmem:[#allocation3 + $0x20] sm:$0xff] (!%p1595_p2) }
 0x33c   : > { %v2461_v60 = vld [vmem:[#allocation3 + $0x38] sm:$0xff] (!%p1595_p2) }
 0x33d   : > { %v2455_v31 = vld [vmem:[#allocation3 + $0x28] sm:$0xff] (!%p1595_p2) }
 0x340   : > { %v1752_v40 = vpop.f32.mrb[4].mxu1 }
 0x341   : > { %v1157_v55 = vadd.f32 %v1752_v40, %v972_v47  ;;  %v1116_v42 = vpop.f32.mrb[5].mxu1 }
 0x342   : > { %v1155_v0 = vadd.f32 %v1116_v42, %v970_v36  ;;  %v1753_v51 = vpop.f32.mrb[6].mxu1 }
 0x343   : > { %1173 = vst [vmem:[#allocation3 + $0x50] sm:$0xff] %v1157_v55  ;;  %v1158_v43 = vadd.f32 %v1753_v51, %v973_v35  ;;  %v1744_v45 = vpop.f32.mrb[16].mxu0  ;;  %v1119_v58 = vpop.f32.mrb[7].mxu1 }
 0x344   : > { %1171 = vst [vmem:[#allocation3 + $0x40] sm:$0xff] %v1155_v0  ;;  %v1149_v7 = vadd.f32 %v1744_v45, %v964_v23  ;;  %v1156_v48 = vadd.f32 %v1119_v58, %v971_v56  ;;  %v1084_v9 = vpop.f32.mrb[17].mxu0 }
 0x345   : > { %1174 = vst [vmem:[#allocation3 + $0x58] sm:$0xff] %v1158_v43  ;;  %v1147_v50 = vadd.f32 %v1084_v9, %v962_v4  ;;  %v1745_v11 = vpop.f32.mrb[18].mxu0 }
 0x346   : > { %1165 = vst [vmem:[#allocation3 + $0x10] sm:$0xff] %v1149_v7  ;;  %1172 = vst [vmem:[#allocation3 + $0x48] sm:$0xff] %v1156_v48  ;;  %v1150_v12 = vadd.f32 %v1745_v11, %v965_v5  ;;  %v1087_v3 = vpop.f32.mrb[19].mxu0 }
 0x347   : > { %1163 = vst [vmem:[#allocation3] sm:$0xff] %v1147_v50  ;;  %v1148_v13 = vadd.f32 %v1087_v3, %v963_v59 }
 0x348   : > { %1166 = vst [vmem:[#allocation3 + $0x18] sm:$0xff] %v1150_v12 }
 0x349   : > { %1164 = vst [vmem:[#allocation3 + $0x8] sm:$0xff] %v1148_v13 }
 0x34a   : > { %v2475_v47 = vld [vmem:[#allocation3 + $0x50] sm:$0xff] (!%p1595_p2) }
 0x34b   : > { %v1756_v54 = vpop.f32.mrb[8].mxu1  ;;  %1199 = sbr.rel (%p1595_p2) target bundleno = 1019 (0x3fb), region = 85  ;;  %v2469_v46 = vld [vmem:[#allocation3 + $0x40] sm:$0xff] (!%p1595_p2) }
 0x34c   : > { %v1161_v22 = vadd.f32 %v1756_v54, %v976_v18  ;;  %v1132_v20 = vpop.f32.mrb[9].mxu1  ;;  %v2473_v41 = vld [vmem:[#allocation3 + $0x58] sm:$0xff] (!%p1595_p2) }
 0x34d   : > { %v1159_v29 = vadd.f32 %v1132_v20, %v974_v19  ;;  %v1757_v21 = vpop.f32.mrb[10].mxu1  ;;  %v2443_v27 = vld [vmem:[#allocation3 + $0x10] sm:$0xff] (!%p1595_p2)  ;;  %v2467_v38 = vld [vmem:[#allocation3 + $0x48] sm:$0xff] (!%p1595_p2) }
 0x34e   : > { %1177 = vst [vmem:[#allocation3 + $0x70] sm:$0xff] %v1161_v22  ;;  %v1162_v26 = vadd.f32 %v1757_v21, %v977_v16  ;;  %v1135_v28 = vpop.f32.mrb[11].mxu1  ;;  %v2445_v30 = vld [vmem:[#allocation3] sm:$0xff] (!%p1595_p2)  ;;  %1940 = vrcp.f32 (!%p1595_p2), %v2443_v27 }
 0x34f   : > { %1175 = vst [vmem:[#allocation3 + $0x60] sm:$0xff] %v1159_v29  ;;  %v1160_v32 = vadd.f32 %v1135_v28, %v975_v25  ;;  %v2447_v61 = vld [vmem:[#allocation3 + $0x18] sm:$0xff] (!%p1595_p2)  ;;  %1942 = vrcp.f32 (!%p1595_p2), %v2445_v30 }
 0x350   : > { %1178 = vst [vmem:[#allocation3 + $0x78] sm:$0xff] %v1162_v26  ;;  %v2450_v33 = vld [vmem:[#allocation3 + $0x8] sm:$0xff] (!%p1595_p2)  ;;  %1944 = vrcp.f32 (!%p1595_p2), %v2447_v61 }
 0x351   : > { %1176 = vst [vmem:[#allocation3 + $0x68] sm:$0xff] %v1160_v32  ;;  %1946 = vrcp.f32 (!%p1595_p2), %v2450_v33 }
 0x352   : > { %1948 = vrcp.f32 %v2455_v31 }
 0x353   : > { %1950 = vrcp.f32 %v2457_v24 }
 0x354   : > { %1952 = vrcp.f32 %v2461_v60 }
 0x355   : > { %1954 = vrcp.f32 %v2463_v63  ;;  %v2487_v42 = vld [vmem:[#allocation3 + $0x70] sm:$0xff] }
 0x356   : > { %1956 = vrcp.f32 %v2467_v38  ;;  %v2481_v49 = vld [vmem:[#allocation3 + $0x60] sm:$0xff] }
 0x357   : > { %1958 = vrcp.f32 %v2469_v46  ;;  %v2485_v53 = vld [vmem:[#allocation3 + $0x78] sm:$0xff] }
 0x358   : > { %v1941_v34 = vpop.eup %1940  ;;  %1960 = vrcp.f32 %v2473_v41  ;;  %v2479_v36 = vld [vmem:[#allocation3 + $0x68] sm:$0xff] }
 0x359   : > { %v1943_v37 = vpop.eup %1942  ;;  %1244 = vperm.xlu1 %1939, %v1941_v34   ;;  %1962 = vrcp.f32 %v2475_v47 }
 0x35a   : > { %v1945_v44 = vpop.eup %1944  ;;  %1234 = vperm.xlu0 %1938, %v1943_v37   ;;  %1964 = vrcp.f32 %v2479_v36 }
 0x35b   : > { %v1947_v10 = vpop.eup %1946  ;;  %1966 = vrcp.f32 %v2481_v49 }
 0x35c   : > { %v1949_v15 = vpop.eup %1948  ;;  %1968 = vrcp.f32 %v2485_v53 }
 0x35d   : > { %1249 = vperm.xlu1 %1939, %v1945_v44   ;;  %v1951_v39 = vpop.eup %1950  ;;  %1970 = vrcp.f32 %v2487_v42 }
 0x35e   : > { %1239 = vperm.xlu0 %1938, %v1947_v10   ;;  %v1953_v40 = vpop.eup %1952 }
 0x35f   : > { %v1955_v35 = vpop.eup %1954 }
 0x360   : > { %v1957_v55 = vpop.eup %1956 }
 0x361   : > { %1259 = vperm.xlu1 %1939, %v1949_v15   ;;  %v1959_v17 = vpop.eup %1958 }
 0x362   : > { %1254 = vperm.xlu0 %1938, %v1951_v39   ;;  %v1961_v23 = vpop.eup %1960 }
 0x363   : > { %v1963_v56 = vpop.eup %1962 }
 0x364   : > { %v1965_v62 = vpop.eup %1964 }
 0x365   : > { %1269 = vperm.xlu1 %1939, %v1953_v40   ;;  %v1967_v0 = vpop.eup %1966 }
 0x366   : > { %1264 = vperm.xlu0 %1938, %v1955_v35   ;;  %v1969_v51 = vpop.eup %1968 }
 0x367   : > { %v1971_v4 = vpop.eup %1970 }
 0x369   : > { %1279 = vperm.xlu1 %1939, %v1957_v55  }
 0x36a   : > { %1274 = vperm.xlu0 %1938, %v1959_v17  }
 0x36d   : > { %1289 = vperm.xlu1 %1939, %v1961_v23  }
 0x36e   : > { %1284 = vperm.xlu0 %1938, %v1963_v56  }
 0x371   : > { %1299 = vperm.xlu1 %1939, %v1965_v62  }
 0x372   : > { %1294 = vperm.xlu0 %1938, %v1967_v0  }
 0x375   : > { %1309 = vperm.xlu1 %1939, %v1969_v51  }
 0x376   : > { %1304 = vperm.xlu0 %1938, %v1971_v4  }
 0x3d8   : > { %v1245_v43 = vpop.permute.xlu1 %1244 }
 0x3d9   : > { %v1235_v45 = vpop.permute.xlu0 %1234  ;;  %v1314_v5 = vmul.f32 %v1245_v43, %v2443_v27 }
 0x3da   : > { %v1312_v9 = vmul.f32 %v1235_v45, %v2445_v30 }
 0x3dc   : > { %v1250_v58 = vpop.permute.xlu1 %1249 }
 0x3dd   : > { %v1315_v7 = vmul.f32 %v1250_v58, %v2447_v61  ;;  %v1240_v48 = vpop.permute.xlu0 %1239 }
 0x3de   : > { %v1313_v59 = vmul.f32 %v1240_v48, %v2450_v33 }
 0x3df   : > { %v1638_v50 = vpack.c.bf16 %v1315_v7, %v1314_v5 }
 0x3e0   : > { %v1633_v11 = vpack.c.bf16 %v1313_v59, %v1312_v9  ;;  %v1260_v12 = vpop.permute.xlu1 %1259 }
 0x3e1   : > { %1670 = vst [vmem:[%s2170_s26 + $0x8] sm:$0xff] %v1638_v50   ;;  %v1317_v3 = vmul.f32 %v1260_v12, %v2455_v31  ;;  %v1255_v8 = vpop.permute.xlu0 %1254 }
 0x3e2   : > { %1634 = vst [vmem:[%s2170_s26] sm:$0xff] %v1633_v11   ;;  %v1316_v52 = vmul.f32 %v1255_v8, %v2457_v24 }
 0x3e4   : > { %v1643_v13 = vpack.c.bf16 %v1317_v3, %v1316_v52  ;;  %v1270_v14 = vpop.permute.xlu1 %1269 }
 0x3e5   : > { %v1319_v57 = vmul.f32 %v1270_v14, %v2461_v60  ;;  %v1265_v2 = vpop.permute.xlu0 %1264 }
 0x3e6   : > { %1671 = vst [vmem:[%s2170_s26 + $0x10] sm:$0xff] %v1643_v13   ;;  %v1318_v6 = vmul.f32 %v1265_v2, %v2463_v63 }
 0x3e8   : > { %v1648_v18 = vpack.c.bf16 %v1319_v57, %v1318_v6  ;;  %v1280_v19 = vpop.permute.xlu1 %1279 }
 0x3e9   : > { %v1321_v54 = vmul.f32 %v1280_v19, %v2467_v38  ;;  %v1275_v16 = vpop.permute.xlu0 %1274 }
 0x3ea   : > { %1672 = vst [vmem:[%s2170_s26 + $0x18] sm:$0xff] %v1648_v18   ;;  %v1320_v22 = vmul.f32 %v1275_v16, %v2469_v46 }
 0x3ec   : > { %v1653_v20 = vpack.c.bf16 %v1321_v54, %v1320_v22  ;;  %v1290_v25 = vpop.permute.xlu1 %1289 }
 0x3ed   : > { %v1323_v29 = vmul.f32 %v1290_v25, %v2473_v41  ;;  %v1285_v21 = vpop.permute.xlu0 %1284 }
 0x3ee   : > { %1673 = vst [vmem:[%s2170_s26 + $0x20] sm:$0xff] %v1653_v20   ;;  %v1322_v26 = vmul.f32 %v1285_v21, %v2475_v47 }
 0x3f0   : > { %v1658_v28 = vpack.c.bf16 %v1323_v29, %v1322_v26  ;;  %v1300_v32 = vpop.permute.xlu1 %1299 }
 0x3f1   : > { %v1325_v27 = vmul.f32 %v1300_v32, %v2479_v36  ;;  %v1295_v30 = vpop.permute.xlu0 %1294 }
 0x3f2   : > { %1674 = vst [vmem:[%s2170_s26 + $0x28] sm:$0xff] %v1658_v28   ;;  %v1324_v61 = vmul.f32 %v1295_v30, %v2481_v49 }
 0x3f4   : > { %v1663_v1 = vpack.c.bf16 %v1325_v27, %v1324_v61  ;;  %v1310_v33 = vpop.permute.xlu1 %1309 }
 0x3f5   : > { %v1327_v31 = vmul.f32 %v1310_v33, %v2485_v53  ;;  %v1305_v24 = vpop.permute.xlu0 %1304 }
 0x3f6   : > { %1675 = vst [vmem:[%s2170_s26 + $0x30] sm:$0xff] %v1663_v1   ;;  %v1326_v60 = vmul.f32 %v1305_v24, %v2487_v42 }
 0x3f8   : > { %v1668_v63 = vpack.c.bf16 %v1327_v31, %v1326_v60 }
 0x3fa   : > { %1676 = vst [vmem:[%s2170_s26 + $0x38] sm:$0xff] %v1668_v63  }
 0x3fb PF: > { %s14_s23 = sadd.s32 1, %s2042_s23   ;;  %s2553_s28 = sld [smem:[#allocation5_spill]] }
 0x3fc   : > { %p11_p3 = scmp.ge.s32.totalorder %s14_s23, 18   ;;  %s2554_s30 = sld [smem:[#allocation6_spill]] }
 0x3fd   : > { %s2555_s15 = smov %s2014_s16  ;;  %s2556_s16 = smov %s2138_s5 }
 0x3fe   : > { %s2557_s17 = smov %s2030_s20  ;;  %s2558_s18 = smov %s2034_s21 }
 0x3ff   : > { %s2559_s19 = smov %s2038_s22  ;;  %s2560_s20 = smov %s2564_s24 }
 0x400   :  { %13 = sbr.rel (!%p11_p3) target bundleno = 7 (0x7), region = 129 }
 0x401   : > { %s2561_s21 = smov %s2553_s28 }
 0x402   : > { %s2562_s22 = smov %s2554_s30 }

</bundles_post_ra>
